<compile_context>
chip_gen: v5e
topology: v5e:2x2
jax: 0.10.0
libtpu: 0.0.40
codegen_flags: <defaults>
</compile_context>

<pallas_src>
import math

import jax
import jax.numpy as jnp
from jax.experimental import pallas as pl
from jax.experimental.pallas import tpu as pltpu


# ------------------------- constants (built once, tiny) -----------------------

_TABLE_VALS = [16, 16, 16, 16, 17, 18, 21, 24,
               16, 16, 16, 16, 17, 19, 22, 25,
               16, 16, 17, 18, 20, 22, 25, 29,
               16, 16, 18, 21, 24, 27, 31, 36,
               17, 17, 20, 24, 30, 35, 41, 47,
               18, 19, 22, 27, 35, 44, 54, 65,
               21, 22, 25, 31, 41, 54, 70, 88,
               24, 25, 29, 36, 47, 65, 88, 115]


def _build_table():
    return jnp.asarray(_TABLE_VALS, dtype=jnp.float32) / 255.0          # (64,)


def _build_dct_kernel():
    """kernel[i*8+j, u*8+v] = cos((2i+1)u pi/16) cos((2j+1)v pi/16) r(u) r(v)."""
    u = jnp.arange(8, dtype=jnp.float32)
    iu = 2.0 * jnp.arange(8, dtype=jnp.float32) + 1.0
    cos = jnp.cos(iu[:, None] * u[None, :] * (math.pi / 16.0))          # (i, u)
    r = jnp.where(u == 0, math.sqrt(1.0 / 8.0), math.sqrt(2.0 / 8.0))   # (u,)
    a = cos * r[None, :]                                                # (i, u)
    return jnp.einsum("iu,jv->ijuv", a, a).reshape(64, 64)              # (64, 64)


TABLE = _build_table()
DCT_KERNEL = _build_dct_kernel()


# --------------------------------- kernel -------------------------------------

def _implicit_trans_kernel(x_ref, w_ref, k_ref, o_ref):
    """Fused: (x * weight) @ K_blockdiag.  Blocks: (TM, 128) x (128, 128)."""
    xw = x_ref[...].astype(jnp.float32) * w_ref[...].astype(jnp.float32)
    y = jnp.dot(xw, k_ref[...], preferred_element_type=jnp.float32)
    o_ref[...] = y.astype(o_ref.dtype)


# -------------------------------- wrapper --------------------------------------

def _round_up(a, b):
    return ((a + b - 1) // b) * b


def implicit_trans(x, weight, factor, bias, *, max_tile_rows=4096):
    """x, weight: (B, H, W, 64) NHWC; factor, bias: (64,).  Returns (B, H, W, 64)."""
    B, H, W, C = x.shape
    assert C == 64, "ImplicitTrans_org operates on 64 channels (8x8 DCT)."
    pack = 2                               # 2 pixels per row -> 128 lanes (dense vst)
    C2 = pack * C                          # 128

    factor = jnp.asarray(factor, jnp.float32).reshape(-1)
    bias = jnp.asarray(bias, jnp.float32).reshape(-1)

    # Effective 1x1 conv matrix (per-out-channel scaled DCT), transposed for NHWC:
    #   wmat[i, o] = dct_kernel[o, i] * (table[o]*factor[o] + bias[o])
    scale = TABLE * factor + bias                                        # (64,)
    wmat = (DCT_KERNEL * scale[:, None]).T                               # (Cin, Cout)
    wblk = jnp.kron(jnp.eye(pack, dtype=wmat.dtype), wmat)               # (128, 128)

    M = B * H * W
    x2 = x.reshape(M, C)                    # free reshapes (contiguous)
    w2 = weight.reshape(M, C)
    M_pad = M
    if M % pack:                            # only when B*H*W is odd: pad 1 pixel
        x2 = jnp.pad(x2, ((0, 1), (0, 0)))
        w2 = jnp.pad(w2, ((0, 1), (0, 0)))
        M_pad = M + 1
    rows_packed = M_pad // pack
    xp = x2.reshape(rows_packed, C2)        # free reshape
    wp = w2.reshape(rows_packed, C2)

    # Row tile: large to amortize per-step overhead, multiple of 8 sublanes,
    # and small enough that the grid has >= 2 steps (keeps both v7x TCs busy).
    tm = min(max_tile_rows, max(8, _round_up(pl.cdiv(rows_packed, 2), 8)))
    grid = pl.cdiv(rows_packed, tm)         # last block may be partial (writes masked)

    # VMEM: 3 double-buffered (tm,128) f32 streams + xw temp + weight block, +50%.
    bytes_per_row = C2 * 4
    vmem_needed = (2 * 3 * tm * bytes_per_row
                   + tm * bytes_per_row
                   + 2 * C2 * C2 * 4)
    vmem_limit = max(int(vmem_needed * 1.5), 32 * 1024 * 1024)
    vmem_limit = min(vmem_limit, 56 * 1024 * 1024)   # headroom under v7x's 64 MiB

    out = pl.pallas_call(
        _implicit_trans_kernel,
        out_shape=jax.ShapeDtypeStruct((rows_packed, C2), x.dtype),
        grid=(grid,),
        in_specs=[
            pl.BlockSpec((tm, C2), lambda i: (i, 0)),
            pl.BlockSpec((tm, C2), lambda i: (i, 0)),
            pl.BlockSpec((C2, C2), lambda i: (0, 0)),
        ],
        out_specs=pl.BlockSpec((tm, C2), lambda i: (i, 0)),
        compiler_params=pltpu.CompilerParams(
            dimension_semantics=("parallel",),
            vmem_limit_bytes=vmem_limit,
        ),
    )(xp, wp, wblk)

    y = out.reshape(M_pad, C)
    if M_pad != M:                          # rare (odd B*H*W) — drop the pad pixel
        y = y[:M]
    return y.reshape(B, H, W, C)


# ----------------------------------- main ---------------------------------------

if __name__ == "__main__":
    key = jax.random.PRNGKey(0)
    kx, kw = jax.random.split(key, 2)

    # NHWC (2, 32, 32, 64)  <->  PyTorch NCHW (2, 64, 32, 32)
    B, H, W, C = 2, 32, 32, 64
    x = jax.random.normal(kx, (B, H, W, C), jnp.float32)
    weight = jax.random.normal(kw, (B, H, W, C), jnp.float32)
    factor = jnp.ones((C,), jnp.float32)     # nn.Parameter init: ones
    bias = jnp.zeros((C,), jnp.float32)      # nn.Parameter init: zeros

    y = jax.jit(implicit_trans)(x, weight, factor, bias)
    jax.block_until_ready(y)

    # plain-JAX reference (same math, no Pallas) for a sanity check
    scale_ref = TABLE * factor + bias
    wmat_ref = (DCT_KERNEL * scale_ref[:, None]).T
    y_ref = jnp.einsum("bhwc,cd->bhwd", x * weight, wmat_ref)
    assert y.shape == (B, H, W, C)
    assert jnp.allclose(y, y_ref, rtol=1e-4, atol=1e-4), float(jnp.max(jnp.abs(y - y_ref)))

    print("KERNEL_OK")
</pallas_src>

<mosaic_0001>
module attributes {stable_mosaic.version = 11 : i64} {
  func.func @_implicit_trans_kernel(%arg0: i32, %arg1: memref<512x128xf32, #tpu.memory_space<vmem>>, %arg2: memref<512x128xf32, #tpu.memory_space<vmem>>, %arg3: memref<128x128xf32, #tpu.memory_space<vmem>>, %arg4: memref<512x128xf32, #tpu.memory_space<vmem>>) attributes {dimension_semantics = [#tpu.dimension_semantics<parallel>], iteration_bounds = array<i64: 2>, scalar_prefetch = 0 : i64, scratch_operands = 0 : i64, tpu.core_type = #tpu.core_type<tc>, window_params = [{transform_indices = @transform_0, window_bounds = array<i64: 512, 128>}, {transform_indices = @transform_1, window_bounds = array<i64: 512, 128>}, {pipeline_mode = #tpu.pipeline_mode<synchronous>, transform_indices = @transform_2, window_bounds = array<i64: 128, 128>}, {transform_indices = @transform_3, window_bounds = array<i64: 512, 128>}]} {
    %c0 = arith.constant 0 : index
    %c0_0 = arith.constant 0 : index
    %0 = vector.load %arg1[%c0, %c0_0] : memref<512x128xf32, #tpu.memory_space<vmem>>, vector<512x128xf32>
    %c0_1 = arith.constant 0 : index
    %c0_2 = arith.constant 0 : index
    %1 = vector.load %arg2[%c0_1, %c0_2] : memref<512x128xf32, #tpu.memory_space<vmem>>, vector<512x128xf32>
    %2 = arith.mulf %0, %1 : vector<512x128xf32>
    %c0_3 = arith.constant 0 : index
    %c0_4 = arith.constant 0 : index
    %3 = vector.load %arg3[%c0_3, %c0_4] : memref<128x128xf32, #tpu.memory_space<vmem>>, vector<128x128xf32>
    %cst = arith.constant dense<0.000000e+00> : vector<512x128xf32>
    %4 = tpu.matmul %2, %3, %cst {dimension_numbers = #tpu.dot_dimension_numbers<[1], [0], [0], [1], [0, 0, 1, 1], [], []>} : vector<512x128xf32>, vector<128x128xf32>, vector<512x128xf32> -> vector<512x128xf32>
    %c0_5 = arith.constant 0 : index
    %c0_6 = arith.constant 0 : index
    %5 = vector.load %arg4[%c0_5, %c0_6] : memref<512x128xf32, #tpu.memory_space<vmem>>, vector<512x128xf32>
    tpu.vector_store %arg4[%c0_5, %c0_6], %4 {strides = array<i32>} : memref<512x128xf32, #tpu.memory_space<vmem>>, vector<512x128xf32>,
    return
  }
  func.func @transform_0(%arg0: i32) -> (i32, i32) {
    %c0_i32 = arith.constant 0 : i32
    %c0_i32_0 = arith.constant 0 : i32
    return %arg0, %c0_i32 : i32, i32
  }
  func.func @transform_1(%arg0: i32) -> (i32, i32) {
    %c0_i32 = arith.constant 0 : i32
    %c0_i32_0 = arith.constant 0 : i32
    return %arg0, %c0_i32 : i32, i32
  }
  func.func @transform_2(%arg0: i32) -> (i32, i32) {
    %c0_i32 = arith.constant 0 : i32
    %c0_i32_0 = arith.constant 0 : i32
    %c0_i32_1 = arith.constant 0 : i32
    return %c0_i32, %c0_i32_0 : i32, i32
  }
  func.func @transform_3(%arg0: i32) -> (i32, i32) {
    %c0_i32 = arith.constant 0 : i32
    %c0_i32_0 = arith.constant 0 : i32
    return %arg0, %c0_i32 : i32, i32
  }
}

</mosaic_0001>

<bundles_post_ra>
// kernel: implicit_trans.1
= control target key start
LH: loop header
LB: loop body
LE: loop exit
PB: predicated region body
PF: predicated region fallthrough
CT: control target
= control target key end

     0   :  { %s842_s12 = smov 0   ;;  %s1113_s0 = inlined_call_operand.vmem [shape: f32[1024,128], index: 0, kind: input, shape index: {}]   ;;  %s1114_s1 = inlined_call_operand.vmem [shape: f32[1024,128], index: 1, kind: input, shape index: {}]   ;;  %s1115_s2 = inlined_call_operand.vmem [shape: f32[128,128], index: 2, kind: input, shape index: {}]   ;;  %s1116_s3 = inlined_call_operand.vmem [shape: f32[1024,128], index: 3, kind: output, shape index: {}]  }
   0x1 LB: > { %s745_s13 = sadd.s32 4294967295, %s820_s12   ;;  %p749_p0 = scmp.ge.s32.totalorder %s820_s12, 1  ;;  %s820_s12 = sphi %s842_s12, %s13_s12  }
   0x2   : > { %p149_p1 = scmp.lt.s32.totalorder %s820_s12, 3 }
   0x4   : > { %p150_p2 = pnand %p749_p0, %p149_p1 }
   0x5   : > { %s750_s24 = sshll.u32 (!%p150_p2), %s745_s13, 6 }
   0x6   : > { %153 = sbr.rel (%p150_p2) target bundleno = 297 (0x129), region = 32  ;;  %p179_p3 = scmp.lt.s32.totalorder (!%p150_p2), %s750_s24, 127 }
   0xb   : > { %v403_v0 = vld [vmem:[%s1115_s2 + $0x78] sm:$0xff]  ;;  %v402_v1 = vld [vmem:[%s1115_s2 + $0x70] sm:$0xff]  ;;  %v401_v2 = vld [vmem:[%s1115_s2 + $0x68] sm:$0xff]  ;;  %s1118_s24 = smov (!%p179_p3, %s750_s24), 127 }
   0xc   : > { %759 = vmatpush.msra.mxu2 %v403_v0  ;;  %760 = vmatpush.msra.mxu3 %v403_v0  ;;  %v400_v3 = vld [vmem:[%s1115_s2 + $0x60] sm:$0xff]  ;;  %v399_v4 = vld [vmem:[%s1115_s2 + $0x58] sm:$0xff]  ;;  %v398_v5 = vld [vmem:[%s1115_s2 + $0x50] sm:$0xff]  ;;  %s883_s10 = sshll.u32 %s1118_s24, 3 }
   0xd   : > { %404 = vmatpush.msra.mxu0 %v403_v0  ;;  %758 = vmatpush.msra.mxu1 %v403_v0  ;;  %v397_v6 = vld [vmem:[%s1115_s2 + $0x48] sm:$0xff]  ;;  %v396_v7 = vld [vmem:[%s1115_s2 + $0x40] sm:$0xff]  ;;  %v395_v8 = vld [vmem:[%s1115_s2 + $0x38] sm:$0xff]  ;;  %s892_s16 = scalar_lea.vmem %s1113_s0, %s883_s10  ;;  %s901_s21 = scalar_lea.vmem %s1114_s1, %s883_s10 }
   0xe   : > { %762 = vmatpush.msra.mxu2 %v402_v1  ;;  %763 = vmatpush.msra.mxu3 %v402_v1  ;;  %v394_v9 = vld [vmem:[%s1115_s2 + $0x30] sm:$0xff]  ;;  %v393_v10 = vld [vmem:[%s1115_s2 + $0x28] sm:$0xff]  ;;  %v392_v11 = vld [vmem:[%s1115_s2 + $0x20] sm:$0xff]  ;;  %s1044_s30 = scalar_lea.vmem %s1116_s3, %s883_s10 }
   0xf   : > { %405 = vmatpush.msra.mxu0 %v402_v1  ;;  %761 = vmatpush.msra.mxu1 %v402_v1  ;;  %v391_v12 = vld [vmem:[%s1115_s2 + $0x18] sm:$0xff]  ;;  %v390_v13 = vld [vmem:[%s1115_s2 + $0x10] sm:$0xff]  ;;  %v228_v14 = vld [vmem:[%s892_s16 + $0x100] sm:$0xff] }
  0x10   : > { %765 = vmatpush.msra.mxu2 %v401_v2  ;;  %766 = vmatpush.msra.mxu3 %v401_v2  ;;  %v292_v15 = vld [vmem:[%s901_s21 + $0x100] sm:$0xff]  ;;  %v389_v18 = vld [vmem:[%s1115_s2 + $0x8] sm:$0xff]  ;;  %v230_v40 = vld [vmem:[%s892_s16 + $0x110] sm:$0xff] }
  0x11   : > { %406 = vmatpush.msra.mxu0 %v401_v2  ;;  %764 = vmatpush.msra.mxu1 %v401_v2  ;;  %v244_v16 = vld [vmem:[%s892_s16 + $0x180] sm:$0xff]  ;;  %v356_v24 = vmul.f32 %v292_v15, %v228_v14  ;;  %v229_v28 = vld [vmem:[%s892_s16 + $0x108] sm:$0xff]  ;;  %v294_v41 = vld [vmem:[%s901_s21 + $0x110] sm:$0xff] }
  0x12   : > { %768 = vmatpush.msra.mxu2 %v400_v3  ;;  %769 = vmatpush.msra.mxu3 %v400_v3  ;;  %v308_v17 = vld [vmem:[%s901_s21 + $0x180] sm:$0xff]  ;;  %v293_v29 = vld [vmem:[%s901_s21 + $0x108] sm:$0xff]  ;;  %v246_v42 = vld [vmem:[%s892_s16 + $0x190] sm:$0xff]  ;;  %v358_v48 = vmul.f32 %v294_v41, %v230_v40 }
  0x13   : > { %407 = vmatpush.msra.mxu0 %v400_v3  ;;  %767 = vmatpush.msra.mxu1 %v400_v3  ;;  %v196_v19 = vld [vmem:[%s892_s16] sm:$0xff]  ;;  %v372_v25 = vmul.f32 %v308_v17, %v244_v16  ;;  %v245_v30 = vld [vmem:[%s892_s16 + $0x188] sm:$0xff]  ;;  %v357_v36 = vmul.f32 %v293_v29, %v229_v28  ;;  %v310_v43 = vld [vmem:[%s901_s21 + $0x190] sm:$0xff] }
  0x14   : > { %771 = vmatpush.msra.mxu2 %v399_v4  ;;  %772 = vmatpush.msra.mxu3 %v399_v4  ;;  %v260_v20 = vld [vmem:[%s901_s21] sm:$0xff]  ;;  %v309_v31 = vld [vmem:[%s901_s21 + $0x188] sm:$0xff]  ;;  %v198_v44 = vld [vmem:[%s892_s16 + $0x10] sm:$0xff]  ;;  %v374_v49 = vmul.f32 %v310_v43, %v246_v42 }
  0x15   : > { %408 = vmatpush.msra.mxu0 %v399_v4  ;;  %770 = vmatpush.msra.mxu1 %v399_v4  ;;  %v212_v21 = vld [vmem:[%s892_s16 + $0x80] sm:$0xff]  ;;  %v324_v26 = vmul.f32 %v260_v20, %v196_v19  ;;  %v197_v32 = vld [vmem:[%s892_s16 + $0x8] sm:$0xff]  ;;  %v373_v37 = vmul.f32 %v309_v31, %v245_v30  ;;  %v262_v45 = vld [vmem:[%s901_s21 + $0x10] sm:$0xff] }
  0x16   : > { %774 = vmatpush.msra.mxu2 %v398_v5  ;;  %775 = vmatpush.msra.mxu3 %v398_v5  ;;  %v276_v22 = vld [vmem:[%s901_s21 + $0x80] sm:$0xff]  ;;  %v261_v33 = vld [vmem:[%s901_s21 + $0x8] sm:$0xff]  ;;  %v214_v46 = vld [vmem:[%s892_s16 + $0x90] sm:$0xff]  ;;  %v326_v50 = vmul.f32 %v262_v45, %v198_v44 }
  0x17   : > { %409 = vmatpush.msra.mxu0 %v398_v5  ;;  %773 = vmatpush.msra.mxu1 %v398_v5  ;;  %v388_v23 = vld [vmem:[%s1115_s2] sm:$0xff]  ;;  %v340_v27 = vmul.f32 %v276_v22, %v212_v21  ;;  %v213_v34 = vld [vmem:[%s892_s16 + $0x88] sm:$0xff]  ;;  %v325_v38 = vmul.f32 %v261_v33, %v197_v32  ;;  %v278_v47 = vld [vmem:[%s901_s21 + $0x90] sm:$0xff] }
  0x18   : > { %777 = vmatpush.msra.mxu2 %v397_v6  ;;  %778 = vmatpush.msra.mxu3 %v397_v6  ;;  %v277_v35 = vld [vmem:[%s901_s21 + $0x88] sm:$0xff]  ;;  %v342_v51 = vmul.f32 %v278_v47, %v214_v46  ;;  %v231_v52 = vld [vmem:[%s892_s16 + $0x118] sm:$0xff]  ;;  %v232_v0 = vld [vmem:[%s892_s16 + $0x120] sm:$0xff] }
  0x19   : > { %410 = vmatpush.msra.mxu0 %v397_v6  ;;  %776 = vmatpush.msra.mxu1 %v397_v6  ;;  %v341_v39 = vmul.f32 %v277_v35, %v213_v34  ;;  %v295_v53 = vld [vmem:[%s901_s21 + $0x118] sm:$0xff]  ;;  %v296_v1 = vld [vmem:[%s901_s21 + $0x120] sm:$0xff]  ;;  %v249_v14 = vld [vmem:[%s892_s16 + $0x1a8] sm:$0xff] }
  0x1a   : > { %780 = vmatpush.msra.mxu2 %v396_v7  ;;  %781 = vmatpush.msra.mxu3 %v396_v7  ;;  %v247_v54 = vld [vmem:[%s892_s16 + $0x198] sm:$0xff]  ;;  %v359_v60 = vmul.f32 %v295_v53, %v231_v52  ;;  %v248_v2 = vld [vmem:[%s892_s16 + $0x1a0] sm:$0xff]  ;;  %v313_v15 = vld [vmem:[%s901_s21 + $0x1a8] sm:$0xff] }
  0x1b   : > { %411 = vmatpush.msra.mxu0 %v396_v7  ;;  %779 = vmatpush.msra.mxu1 %v396_v7  ;;  %v311_v55 = vld [vmem:[%s901_s21 + $0x198] sm:$0xff]  ;;  %v312_v3 = vld [vmem:[%s901_s21 + $0x1a0] sm:$0xff]  ;;  %v201_v16 = vld [vmem:[%s892_s16 + $0x28] sm:$0xff]  ;;  %v377_v21 = vmul.f32 %v313_v15, %v249_v14 }
  0x1c   : > { %783 = vmatpush.msra.mxu2 %v395_v8  ;;  %784 = vmatpush.msra.mxu3 %v395_v8  ;;  %v199_v56 = vld [vmem:[%s892_s16 + $0x18] sm:$0xff]  ;;  %v375_v61 = vmul.f32 %v311_v55, %v247_v54  ;;  %v200_v4 = vld [vmem:[%s892_s16 + $0x20] sm:$0xff]  ;;  %v265_v17 = vld [vmem:[%s901_s21 + $0x28] sm:$0xff] }
  0x1d   : > { %412 = vmatpush.msra.mxu0 %v395_v8  ;;  %782 = vmatpush.msra.mxu1 %v395_v8  ;;  %v263_v57 = vld [vmem:[%s901_s21 + $0x18] sm:$0xff]  ;;  %v264_v5 = vld [vmem:[%s901_s21 + $0x20] sm:$0xff]  ;;  %v360_v8 = vmul.f32 %v296_v1, %v232_v0  ;;  %v281_v19 = vld [vmem:[%s901_s21 + $0xa8] sm:$0xff]  ;;  %v329_v22 = vmul.f32 %v265_v17, %v201_v16 }
  0x1e   : > { %786 = vmatpush.msra.mxu2 %v394_v9  ;;  %787 = vmatpush.msra.mxu3 %v394_v9  ;;  %v215_v58 = vld [vmem:[%s892_s16 + $0x98] sm:$0xff]  ;;  %v327_v62 = vmul.f32 %v263_v57, %v199_v56  ;;  %v216_v6 = vld [vmem:[%s892_s16 + $0xa0] sm:$0xff]  ;;  %v202_v28 = vld [vmem:[%s892_s16 + $0x30] sm:$0xff] }
  0x1f   : > { %413 = vmatpush.msra.mxu0 %v394_v9  ;;  %785 = vmatpush.msra.mxu1 %v394_v9  ;;  %v279_v59 = vld [vmem:[%s901_s21 + $0x98] sm:$0xff]  ;;  %v280_v7 = vld [vmem:[%s901_s21 + $0xa0] sm:$0xff]  ;;  %v376_v9 = vmul.f32 %v312_v3, %v248_v2  ;;  %v266_v29 = vld [vmem:[%s901_s21 + $0x30] sm:$0xff] }
  0x20   : > { %789 = vmatpush.msra.mxu2 %v393_v10  ;;  %790 = vmatpush.msra.mxu3 %v393_v10  ;;  %v343_v63 = vmul.f32 %v279_v59, %v215_v58  ;;  %v218_v30 = vld [vmem:[%s892_s16 + $0xb0] sm:$0xff]  ;;  %v330_v34 = vmul.f32 %v266_v29, %v202_v28  ;;  %v203_v40 = vld [vmem:[%s892_s16 + $0x38] sm:$0xff]  ;;  %v204_v52 = vld [vmem:[%s892_s16 + $0x40] sm:$0xff] }
  0x21   : > { %414 = vmatpush.msra.mxu0 %v393_v10  ;;  %788 = vmatpush.msra.mxu1 %v393_v10  ;;  %v328_v10 = vmul.f32 %v264_v5, %v200_v4  ;;  %v282_v31 = vld [vmem:[%s901_s21 + $0xb0] sm:$0xff]  ;;  %v267_v41 = vld [vmem:[%s901_s21 + $0x38] sm:$0xff]  ;;  %v268_v53 = vld [vmem:[%s901_s21 + $0x40] sm:$0xff] }
  0x22   : > { %792 = vmatpush.msra.mxu2 %v392_v11  ;;  %793 = vmatpush.msra.mxu3 %v392_v11  ;;  %v346_v35 = vmul.f32 %v282_v31, %v218_v30  ;;  %v219_v42 = vld [vmem:[%s892_s16 + $0xb8] sm:$0xff]  ;;  %v331_v46 = vmul.f32 %v267_v41, %v203_v40  ;;  %v220_v54 = vld [vmem:[%s892_s16 + $0xc0] sm:$0xff]  ;;  %v332_v58 = vmul.f32 %v268_v53, %v204_v52  ;;  %v205_v0 = vld [vmem:[%s892_s16 + $0x48] sm:$0xff] }
  0x23   : > { %415 = vmatpush.msra.mxu0 %v392_v11  ;;  %791 = vmatpush.msra.mxu1 %v392_v11  ;;  %v344_v11 = vmul.f32 %v280_v7, %v216_v6  ;;  %v283_v43 = vld [vmem:[%s901_s21 + $0xb8] sm:$0xff]  ;;  %v284_v55 = vld [vmem:[%s901_s21 + $0xc0] sm:$0xff]  ;;  %v269_v1 = vld [vmem:[%s901_s21 + $0x48] sm:$0xff] }
  0x24   : > { %795 = vmatpush.msra.mxu2 %v391_v12  ;;  %796 = vmatpush.msra.mxu3 %v391_v12  ;;  %v347_v47 = vmul.f32 %v283_v43, %v219_v42  ;;  %v348_v59 = vmul.f32 %v284_v55, %v220_v54  ;;  %v221_v2 = vld [vmem:[%s892_s16 + $0xc8] sm:$0xff]  ;;  %v333_v6 = vmul.f32 %v269_v1, %v205_v0  ;;  %v222_v14 = vld [vmem:[%s892_s16 + $0xd0] sm:$0xff] }
  0x25   : > { %416 = vmatpush.msra.mxu0 %v391_v12  ;;  %794 = vmatpush.msra.mxu1 %v391_v12  ;;  %v233_v12 = vld [vmem:[%s892_s16 + $0x128] sm:$0xff]  ;;  %v286_v15 = vld [vmem:[%s901_s21 + $0xd0] sm:$0xff] }
  0x26   : > { %798 = vmatpush.msra.mxu2 %v390_v13  ;;  %799 = vmatpush.msra.mxu3 %v390_v13  ;;  %v285_v3 = vld [vmem:[%s901_s21 + $0xc8] sm:$0xff] }
  0x27   : > { %417 = vmatpush.msra.mxu0 %v390_v13  ;;  %797 = vmatpush.msra.mxu1 %v390_v13  ;;  %v297_v13 = vld [vmem:[%s901_s21 + $0x128] sm:$0xff]  ;;  %v349_v7 = vmul.f32 %v285_v3, %v221_v2 }
  0x28   : > { %801 = vmatpush.msra.mxu2 %v389_v18  ;;  %802 = vmatpush.msra.mxu3 %v389_v18  ;;  %v361_v20 = vmul.f32 %v297_v13, %v233_v12  ;;  %v206_v12 = vld [vmem:[%s892_s16 + $0x50] sm:$0xff] }
  0x29   : > { %418 = vmatpush.msra.mxu0 %v389_v18  ;;  %800 = vmatpush.msra.mxu1 %v389_v18  ;;  %v217_v18 = vld [vmem:[%s892_s16 + $0xa8] sm:$0xff]  ;;  %v270_v13 = vld [vmem:[%s901_s21 + $0x50] sm:$0xff] }
  0x2a   : > { %804 = vmatpush.msra.mxu2 %v388_v23  ;;  %805 = vmatpush.msra.mxu3 %v388_v23 }
  0x2b   : > { %516 = vmatmul.f32.vlgmr.msra.gmra.mxu2 %v356_v24  ;;  %564 = vmatmul.f32.vlgmr.msra.gmra.mxu3 %v372_v25  ;;  %v234_v24 = vld [vmem:[%s892_s16 + $0x130] sm:$0xff] }
  0x2c   : > { %419 = vmatpush.msra.mxu0 %v388_v23  ;;  %803 = vmatpush.msra.mxu1 %v388_v23  ;;  %v345_v23 = vmul.f32 %v281_v19, %v217_v18  ;;  %v298_v25 = vld [vmem:[%s901_s21 + $0x130] sm:$0xff]  ;;  %v334_v18 = vmul.f32 %v270_v13, %v206_v12  ;;  %v350_v19 = vmul.f32 %v286_v15, %v222_v14 }
  0x2d   : > { %420 = vmatmul.f32.vlgmr.msra.gmra.mxu0 %v324_v26  ;;  %468 = vmatmul.f32.vlgmr.msra.gmra.mxu1 %v340_v27  ;;  %v250_v26 = vld [vmem:[%s892_s16 + $0x1b0] sm:$0xff]  ;;  %v362_v32 = vmul.f32 %v298_v25, %v234_v24  ;;  %v207_v24 = vld [vmem:[%s892_s16 + $0x58] sm:$0xff] }
  0x2e   : > { %v314_v27 = vld [vmem:[%s901_s21 + $0x1b0] sm:$0xff]  ;;  %v271_v25 = vld [vmem:[%s901_s21 + $0x58] sm:$0xff] }
  0x2f   : > { %v378_v33 = vmul.f32 %v314_v27, %v250_v26  ;;  %v223_v26 = vld [vmem:[%s892_s16 + $0xd8] sm:$0xff]  ;;  %v335_v30 = vmul.f32 %v271_v25, %v207_v24 }
  0x30   : > { %v287_v27 = vld [vmem:[%s901_s21 + $0xd8] sm:$0xff] }
  0x31   : > { %v351_v31 = vmul.f32 %v287_v27, %v223_v26 }
  0x33   : > { %519 = vmatmul.f32.gmra.mxu2 %v357_v36  ;;  %567 = vmatmul.f32.gmra.mxu3 %v373_v37  ;;  %v235_v36 = vld [vmem:[%s892_s16 + $0x138] sm:$0xff] }
  0x34   : > { %v299_v37 = vld [vmem:[%s901_s21 + $0x138] sm:$0xff] }
  0x35   : > { %423 = vmatmul.f32.gmra.mxu0 %v325_v38  ;;  %471 = vmatmul.f32.gmra.mxu1 %v341_v39  ;;  %v251_v38 = vld [vmem:[%s892_s16 + $0x1b8] sm:$0xff]  ;;  %v363_v44 = vmul.f32 %v299_v37, %v235_v36  ;;  %v208_v36 = vld [vmem:[%s892_s16 + $0x60] sm:$0xff] }
  0x36   : > { %v315_v39 = vld [vmem:[%s901_s21 + $0x1b8] sm:$0xff]  ;;  %v272_v37 = vld [vmem:[%s901_s21 + $0x60] sm:$0xff] }
  0x37   : > { %v379_v45 = vmul.f32 %v315_v39, %v251_v38  ;;  %v224_v38 = vld [vmem:[%s892_s16 + $0xe0] sm:$0xff]  ;;  %v336_v42 = vmul.f32 %v272_v37, %v208_v36 }
  0x38   : > { %v288_v39 = vld [vmem:[%s901_s21 + $0xe0] sm:$0xff] }
  0x39   : > { %v352_v43 = vmul.f32 %v288_v39, %v224_v38 }
  0x3b   : > { %522 = vmatmul.f32.gmra.mxu2 %v358_v48  ;;  %570 = vmatmul.f32.gmra.mxu3 %v374_v49  ;;  %v236_v48 = vld [vmem:[%s892_s16 + $0x140] sm:$0xff] }
  0x3c   : > { %v300_v49 = vld [vmem:[%s901_s21 + $0x140] sm:$0xff] }
  0x3d   : > { %426 = vmatmul.f32.gmra.mxu0 %v326_v50  ;;  %474 = vmatmul.f32.gmra.mxu1 %v342_v51  ;;  %v252_v50 = vld [vmem:[%s892_s16 + $0x1c0] sm:$0xff]  ;;  %v364_v56 = vmul.f32 %v300_v49, %v236_v48  ;;  %v209_v48 = vld [vmem:[%s892_s16 + $0x68] sm:$0xff] }
  0x3e   : > { %v316_v51 = vld [vmem:[%s901_s21 + $0x1c0] sm:$0xff]  ;;  %v273_v49 = vld [vmem:[%s901_s21 + $0x68] sm:$0xff] }
  0x3f   : > { %v380_v57 = vmul.f32 %v316_v51, %v252_v50  ;;  %v225_v50 = vld [vmem:[%s892_s16 + $0xe8] sm:$0xff]  ;;  %v337_v54 = vmul.f32 %v273_v49, %v209_v48 }
  0x40   : > { %v289_v51 = vld [vmem:[%s901_s21 + $0xe8] sm:$0xff] }
  0x41   : > { %v353_v55 = vmul.f32 %v289_v51, %v225_v50 }
  0x43   : > { %525 = vmatmul.f32.gmra.mxu2 %v359_v60  ;;  %573 = vmatmul.f32.gmra.mxu3 %v375_v61  ;;  %v237_v60 = vld [vmem:[%s892_s16 + $0x148] sm:$0xff] }
  0x44   : > { %v301_v61 = vld [vmem:[%s901_s21 + $0x148] sm:$0xff] }
  0x45   : > { %429 = vmatmul.f32.gmra.mxu0 %v327_v62  ;;  %477 = vmatmul.f32.gmra.mxu1 %v343_v63  ;;  %v253_v62 = vld [vmem:[%s892_s16 + $0x1c8] sm:$0xff]  ;;  %v365_v4 = vmul.f32 %v301_v61, %v237_v60  ;;  %v210_v60 = vld [vmem:[%s892_s16 + $0x70] sm:$0xff] }
  0x46   : > { %v317_v63 = vld [vmem:[%s901_s21 + $0x1c8] sm:$0xff]  ;;  %v274_v61 = vld [vmem:[%s901_s21 + $0x70] sm:$0xff] }
  0x47   : > { %v381_v5 = vmul.f32 %v317_v63, %v253_v62  ;;  %v226_v62 = vld [vmem:[%s892_s16 + $0xf0] sm:$0xff]  ;;  %v338_v2 = vmul.f32 %v274_v61, %v210_v60 }
  0x48   : > { %v290_v63 = vld [vmem:[%s901_s21 + $0xf0] sm:$0xff] }
  0x49   : > { %v354_v3 = vmul.f32 %v290_v63, %v226_v62 }
  0x4b   : > { %528 = vmatmul.f32.gmra.mxu2 %v360_v8  ;;  %576 = vmatmul.f32.gmra.mxu3 %v376_v9  ;;  %v238_v8 = vld [vmem:[%s892_s16 + $0x150] sm:$0xff] }
  0x4c   : > { %v302_v9 = vld [vmem:[%s901_s21 + $0x150] sm:$0xff] }
  0x4d   : > { %432 = vmatmul.f32.gmra.mxu0 %v328_v10  ;;  %480 = vmatmul.f32.gmra.mxu1 %v344_v11  ;;  %v254_v10 = vld [vmem:[%s892_s16 + $0x1d0] sm:$0xff]  ;;  %v366_v16 = vmul.f32 %v302_v9, %v238_v8  ;;  %v211_v8 = vld [vmem:[%s892_s16 + $0x78] sm:$0xff] }
  0x4e   : > { %v318_v11 = vld [vmem:[%s901_s21 + $0x1d0] sm:$0xff]  ;;  %v275_v9 = vld [vmem:[%s901_s21 + $0x78] sm:$0xff] }
  0x4f   : > { %v382_v17 = vmul.f32 %v318_v11, %v254_v10  ;;  %v227_v10 = vld [vmem:[%s892_s16 + $0xf8] sm:$0xff]  ;;  %v339_v14 = vmul.f32 %v275_v9, %v211_v8 }
  0x50   : > { %v291_v11 = vld [vmem:[%s901_s21 + $0xf8] sm:$0xff] }
  0x51   : > { %v355_v15 = vmul.f32 %v291_v11, %v227_v10 }
  0x53   : > { %531 = vmatmul.f32.gmra.mxu2 %v361_v20  ;;  %579 = vmatmul.f32.gmra.mxu3 %v377_v21  ;;  %v239_v20 = vld [vmem:[%s892_s16 + $0x158] sm:$0xff] }
  0x54   : > { %v303_v21 = vld [vmem:[%s901_s21 + $0x158] sm:$0xff] }
  0x55   : > { %435 = vmatmul.f32.gmra.mxu0 %v329_v22  ;;  %483 = vmatmul.f32.gmra.mxu1 %v345_v23  ;;  %v255_v22 = vld [vmem:[%s892_s16 + $0x1d8] sm:$0xff]  ;;  %v367_v28 = vmul.f32 %v303_v21, %v239_v20 }
  0x56   : > { %v319_v23 = vld [vmem:[%s901_s21 + $0x1d8] sm:$0xff] }
  0x57   : > { %v383_v29 = vmul.f32 %v319_v23, %v255_v22 }
  0x5b   : > { %534 = vmatmul.f32.gmra.mxu2 %v362_v32  ;;  %582 = vmatmul.f32.gmra.mxu3 %v378_v33  ;;  %v240_v32 = vld [vmem:[%s892_s16 + $0x160] sm:$0xff] }
  0x5c   : > { %v304_v33 = vld [vmem:[%s901_s21 + $0x160] sm:$0xff] }
  0x5d   : > { %438 = vmatmul.f32.gmra.mxu0 %v330_v34  ;;  %486 = vmatmul.f32.gmra.mxu1 %v346_v35  ;;  %v256_v34 = vld [vmem:[%s892_s16 + $0x1e0] sm:$0xff]  ;;  %v368_v40 = vmul.f32 %v304_v33, %v240_v32 }
  0x5e   : > { %v320_v35 = vld [vmem:[%s901_s21 + $0x1e0] sm:$0xff] }
  0x5f   : > { %v384_v41 = vmul.f32 %v320_v35, %v256_v34 }
  0x63   : > { %537 = vmatmul.f32.gmra.mxu2 %v363_v44  ;;  %585 = vmatmul.f32.gmra.mxu3 %v379_v45  ;;  %v241_v44 = vld [vmem:[%s892_s16 + $0x168] sm:$0xff] }
  0x64   : > { %v305_v45 = vld [vmem:[%s901_s21 + $0x168] sm:$0xff] }
  0x65   : > { %441 = vmatmul.f32.gmra.mxu0 %v331_v46  ;;  %489 = vmatmul.f32.gmra.mxu1 %v347_v47  ;;  %v257_v46 = vld [vmem:[%s892_s16 + $0x1e8] sm:$0xff]  ;;  %v369_v52 = vmul.f32 %v305_v45, %v241_v44 }
  0x66   : > { %v321_v47 = vld [vmem:[%s901_s21 + $0x1e8] sm:$0xff] }
  0x67   : > { %v385_v53 = vmul.f32 %v321_v47, %v257_v46 }
  0x6b   : > { %540 = vmatmul.f32.gmra.mxu2 %v364_v56  ;;  %588 = vmatmul.f32.gmra.mxu3 %v380_v57  ;;  %v242_v56 = vld [vmem:[%s892_s16 + $0x170] sm:$0xff] }
  0x6c   : > { %v306_v57 = vld [vmem:[%s901_s21 + $0x170] sm:$0xff] }
  0x6d   : > { %444 = vmatmul.f32.gmra.mxu0 %v332_v58  ;;  %492 = vmatmul.f32.gmra.mxu1 %v348_v59  ;;  %v258_v58 = vld [vmem:[%s892_s16 + $0x1f0] sm:$0xff]  ;;  %v370_v0 = vmul.f32 %v306_v57, %v242_v56 }
  0x6e   : > { %v322_v59 = vld [vmem:[%s901_s21 + $0x1f0] sm:$0xff] }
  0x6f   : > { %v386_v1 = vmul.f32 %v322_v59, %v258_v58 }
  0x73   : > { %543 = vmatmul.f32.gmra.mxu2 %v365_v4  ;;  %591 = vmatmul.f32.gmra.mxu3 %v381_v5  ;;  %v243_v4 = vld [vmem:[%s892_s16 + $0x178] sm:$0xff] }
  0x74   : > { %v307_v5 = vld [vmem:[%s901_s21 + $0x178] sm:$0xff] }
  0x75   : > { %447 = vmatmul.f32.gmra.mxu0 %v333_v6  ;;  %495 = vmatmul.f32.gmra.mxu1 %v349_v7  ;;  %v259_v6 = vld [vmem:[%s892_s16 + $0x1f8] sm:$0xff]  ;;  %v371_v12 = vmul.f32 %v307_v5, %v243_v4 }
  0x76   : > { %v323_v7 = vld [vmem:[%s901_s21 + $0x1f8] sm:$0xff] }
  0x77   : > { %v387_v13 = vmul.f32 %v323_v7, %v259_v6 }
  0x7b   : > { %546 = vmatmul.f32.gmra.mxu2 %v366_v16  ;;  %594 = vmatmul.f32.gmra.mxu3 %v382_v17 }
  0x7d   : > { %450 = vmatmul.f32.gmra.mxu0 %v334_v18  ;;  %498 = vmatmul.f32.gmra.mxu1 %v350_v19 }
  0x83   : > { %549 = vmatmul.f32.gmra.mxu2 %v367_v28  ;;  %597 = vmatmul.f32.gmra.mxu3 %v383_v29 }
  0x85   : > { %453 = vmatmul.f32.gmra.mxu0 %v335_v30  ;;  %501 = vmatmul.f32.gmra.mxu1 %v351_v31 }
  0x8b   : > { %552 = vmatmul.f32.gmra.mxu2 %v368_v40  ;;  %600 = vmatmul.f32.gmra.mxu3 %v384_v41 }
  0x8d   : > { %456 = vmatmul.f32.gmra.mxu0 %v336_v42  ;;  %504 = vmatmul.f32.gmra.mxu1 %v352_v43 }
  0x93   : > { %555 = vmatmul.f32.gmra.mxu2 %v369_v52  ;;  %603 = vmatmul.f32.gmra.mxu3 %v385_v53 }
  0x95   : > { %459 = vmatmul.f32.gmra.mxu0 %v337_v54  ;;  %507 = vmatmul.f32.gmra.mxu1 %v353_v55 }
  0x9b   : > { %558 = vmatmul.f32.gmra.mxu2 %v370_v0  ;;  %606 = vmatmul.f32.gmra.mxu3 %v386_v1 }
  0x9d   : > { %462 = vmatmul.f32.gmra.mxu0 %v338_v2  ;;  %510 = vmatmul.f32.gmra.mxu1 %v354_v3 }
  0xa3   : > { %561 = vmatmul.f32.gmra.mxu2 %v371_v12  ;;  %609 = vmatmul.f32.gmra.mxu3 %v387_v13 }
  0xa5   : > { %465 = vmatmul.f32.gmra.mxu0 %v339_v14  ;;  %513 = vmatmul.f32.gmra.mxu1 %v355_v15 }
  0xaa   : > { %v421_v16 = vpop.f32.mrf.mxu0  ;;  %v469_v17 = vpop.f32.mrf.mxu1 }
  0xab   : > { %613 = vst [vmem:[%s1044_s30] sm:$0xff] %v421_v16 }
  0xac   : > { %629 = vst [vmem:[%s1044_s30 + $0x80] sm:$0xff] %v469_v17 }
  0xae   : > { %v517_v18 = vpop.f32.mrf.mxu2  ;;  %v565_v19 = vpop.f32.mrf.mxu3 }
  0xaf   : > { %645 = vst [vmem:[%s1044_s30 + $0x100] sm:$0xff] %v517_v18 }
  0xb0   : > { %661 = vst [vmem:[%s1044_s30 + $0x180] sm:$0xff] %v565_v19 }
  0xb2   : > { %v424_v20 = vpop.f32.mrf.mxu0  ;;  %v472_v21 = vpop.f32.mrf.mxu1 }
  0xb3   : > { %614 = vst [vmem:[%s1044_s30 + $0x8] sm:$0xff] %v424_v20 }
  0xb4   : > { %630 = vst [vmem:[%s1044_s30 + $0x88] sm:$0xff] %v472_v21 }
  0xb6   : > { %v520_v22 = vpop.f32.mrf.mxu2  ;;  %v568_v23 = vpop.f32.mrf.mxu3 }
  0xb7   : > { %646 = vst [vmem:[%s1044_s30 + $0x108] sm:$0xff] %v520_v22 }
  0xb8   : > { %662 = vst [vmem:[%s1044_s30 + $0x188] sm:$0xff] %v568_v23 }
  0xba   : > { %v427_v24 = vpop.f32.mrf.mxu0  ;;  %v475_v25 = vpop.f32.mrf.mxu1 }
  0xbb   : > { %615 = vst [vmem:[%s1044_s30 + $0x10] sm:$0xff] %v427_v24 }
  0xbc   : > { %631 = vst [vmem:[%s1044_s30 + $0x90] sm:$0xff] %v475_v25 }
  0xbe   : > { %v523_v26 = vpop.f32.mrf.mxu2  ;;  %v571_v27 = vpop.f32.mrf.mxu3 }
  0xbf   : > { %647 = vst [vmem:[%s1044_s30 + $0x110] sm:$0xff] %v523_v26 }
  0xc0   : > { %663 = vst [vmem:[%s1044_s30 + $0x190] sm:$0xff] %v571_v27 }
  0xc2   : > { %v430_v28 = vpop.f32.mrf.mxu0  ;;  %v478_v29 = vpop.f32.mrf.mxu1 }
  0xc3   : > { %616 = vst [vmem:[%s1044_s30 + $0x18] sm:$0xff] %v430_v28 }
  0xc4   : > { %632 = vst [vmem:[%s1044_s30 + $0x98] sm:$0xff] %v478_v29 }
  0xc6   : > { %v526_v30 = vpop.f32.mrf.mxu2  ;;  %v574_v31 = vpop.f32.mrf.mxu3 }
  0xc7   : > { %648 = vst [vmem:[%s1044_s30 + $0x118] sm:$0xff] %v526_v30 }
  0xc8   : > { %664 = vst [vmem:[%s1044_s30 + $0x198] sm:$0xff] %v574_v31 }
  0xca   : > { %v433_v32 = vpop.f32.mrf.mxu0  ;;  %v481_v33 = vpop.f32.mrf.mxu1 }
  0xcb   : > { %617 = vst [vmem:[%s1044_s30 + $0x20] sm:$0xff] %v433_v32 }
  0xcc   : > { %633 = vst [vmem:[%s1044_s30 + $0xa0] sm:$0xff] %v481_v33 }
  0xce   : > { %v529_v34 = vpop.f32.mrf.mxu2  ;;  %v577_v35 = vpop.f32.mrf.mxu3 }
  0xcf   : > { %649 = vst [vmem:[%s1044_s30 + $0x120] sm:$0xff] %v529_v34 }
  0xd0   : > { %665 = vst [vmem:[%s1044_s30 + $0x1a0] sm:$0xff] %v577_v35 }
  0xd2   : > { %v436_v36 = vpop.f32.mrf.mxu0  ;;  %v484_v37 = vpop.f32.mrf.mxu1 }
  0xd3   : > { %618 = vst [vmem:[%s1044_s30 + $0x28] sm:$0xff] %v436_v36 }
  0xd4   : > { %634 = vst [vmem:[%s1044_s30 + $0xa8] sm:$0xff] %v484_v37 }
  0xd6   : > { %v532_v38 = vpop.f32.mrf.mxu2  ;;  %v580_v39 = vpop.f32.mrf.mxu3 }
  0xd7   : > { %650 = vst [vmem:[%s1044_s30 + $0x128] sm:$0xff] %v532_v38 }
  0xd8   : > { %666 = vst [vmem:[%s1044_s30 + $0x1a8] sm:$0xff] %v580_v39 }
  0xda   : > { %v439_v40 = vpop.f32.mrf.mxu0  ;;  %v487_v41 = vpop.f32.mrf.mxu1 }
  0xdb   : > { %619 = vst [vmem:[%s1044_s30 + $0x30] sm:$0xff] %v439_v40 }
  0xdc   : > { %635 = vst [vmem:[%s1044_s30 + $0xb0] sm:$0xff] %v487_v41 }
  0xde   : > { %v535_v42 = vpop.f32.mrf.mxu2  ;;  %v583_v43 = vpop.f32.mrf.mxu3 }
  0xdf   : > { %651 = vst [vmem:[%s1044_s30 + $0x130] sm:$0xff] %v535_v42 }
  0xe0   : > { %667 = vst [vmem:[%s1044_s30 + $0x1b0] sm:$0xff] %v583_v43 }
  0xe2   : > { %v442_v44 = vpop.f32.mrf.mxu0  ;;  %v490_v45 = vpop.f32.mrf.mxu1 }
  0xe3   : > { %620 = vst [vmem:[%s1044_s30 + $0x38] sm:$0xff] %v442_v44 }
  0xe4   : > { %636 = vst [vmem:[%s1044_s30 + $0xb8] sm:$0xff] %v490_v45 }
  0xe6   : > { %v538_v46 = vpop.f32.mrf.mxu2  ;;  %v586_v47 = vpop.f32.mrf.mxu3 }
  0xe7   : > { %652 = vst [vmem:[%s1044_s30 + $0x138] sm:$0xff] %v538_v46 }
  0xe8   : > { %668 = vst [vmem:[%s1044_s30 + $0x1b8] sm:$0xff] %v586_v47 }
  0xea   : > { %v445_v48 = vpop.f32.mrf.mxu0  ;;  %v493_v49 = vpop.f32.mrf.mxu1 }
  0xeb   : > { %621 = vst [vmem:[%s1044_s30 + $0x40] sm:$0xff] %v445_v48 }
  0xec   : > { %637 = vst [vmem:[%s1044_s30 + $0xc0] sm:$0xff] %v493_v49 }
  0xee   : > { %v541_v50 = vpop.f32.mrf.mxu2  ;;  %v589_v51 = vpop.f32.mrf.mxu3 }
  0xef   : > { %653 = vst [vmem:[%s1044_s30 + $0x140] sm:$0xff] %v541_v50 }
  0xf0   : > { %669 = vst [vmem:[%s1044_s30 + $0x1c0] sm:$0xff] %v589_v51 }
  0xf2   : > { %v448_v52 = vpop.f32.mrf.mxu0  ;;  %v496_v53 = vpop.f32.mrf.mxu1 }
  0xf3   : > { %622 = vst [vmem:[%s1044_s30 + $0x48] sm:$0xff] %v448_v52 }
  0xf4   : > { %638 = vst [vmem:[%s1044_s30 + $0xc8] sm:$0xff] %v496_v53 }
  0xf6   : > { %v544_v54 = vpop.f32.mrf.mxu2  ;;  %v592_v55 = vpop.f32.mrf.mxu3 }
  0xf7   : > { %654 = vst [vmem:[%s1044_s30 + $0x148] sm:$0xff] %v544_v54 }
  0xf8   : > { %670 = vst [vmem:[%s1044_s30 + $0x1c8] sm:$0xff] %v592_v55 }
  0xfa   : > { %v451_v56 = vpop.f32.mrf.mxu0  ;;  %v499_v57 = vpop.f32.mrf.mxu1 }
  0xfb   : > { %623 = vst [vmem:[%s1044_s30 + $0x50] sm:$0xff] %v451_v56 }
  0xfc   : > { %639 = vst [vmem:[%s1044_s30 + $0xd0] sm:$0xff] %v499_v57 }
  0xfe   : > { %v547_v58 = vpop.f32.mrf.mxu2  ;;  %v595_v59 = vpop.f32.mrf.mxu3 }
  0xff   : > { %655 = vst [vmem:[%s1044_s30 + $0x150] sm:$0xff] %v547_v58 }
 0x100   : > { %671 = vst [vmem:[%s1044_s30 + $0x1d0] sm:$0xff] %v595_v59 }
 0x102   : > { %v454_v60 = vpop.f32.mrf.mxu0  ;;  %v502_v61 = vpop.f32.mrf.mxu1 }
 0x103   : > { %624 = vst [vmem:[%s1044_s30 + $0x58] sm:$0xff] %v454_v60 }
 0x104   : > { %640 = vst [vmem:[%s1044_s30 + $0xd8] sm:$0xff] %v502_v61 }
 0x106   : > { %v550_v62 = vpop.f32.mrf.mxu2  ;;  %v598_v63 = vpop.f32.mrf.mxu3 }
 0x107   : > { %656 = vst [vmem:[%s1044_s30 + $0x158] sm:$0xff] %v550_v62 }
 0x108   : > { %672 = vst [vmem:[%s1044_s30 + $0x1d8] sm:$0xff] %v598_v63 }
 0x10a   : > { %v457_v0 = vpop.f32.mrf.mxu0  ;;  %v505_v1 = vpop.f32.mrf.mxu1 }
 0x10b   : > { %625 = vst [vmem:[%s1044_s30 + $0x60] sm:$0xff] %v457_v0 }
 0x10c   : > { %641 = vst [vmem:[%s1044_s30 + $0xe0] sm:$0xff] %v505_v1 }
 0x10e   : > { %v553_v2 = vpop.f32.mrf.mxu2  ;;  %v601_v3 = vpop.f32.mrf.mxu3 }
 0x10f   : > { %657 = vst [vmem:[%s1044_s30 + $0x160] sm:$0xff] %v553_v2 }
 0x110   : > { %673 = vst [vmem:[%s1044_s30 + $0x1e0] sm:$0xff] %v601_v3 }
 0x112   : > { %v460_v4 = vpop.f32.mrf.mxu0  ;;  %v508_v5 = vpop.f32.mrf.mxu1 }
 0x113   : > { %626 = vst [vmem:[%s1044_s30 + $0x68] sm:$0xff] %v460_v4 }
 0x114   : > { %642 = vst [vmem:[%s1044_s30 + $0xe8] sm:$0xff] %v508_v5 }
 0x116   : > { %v556_v6 = vpop.f32.mrf.mxu2  ;;  %v604_v7 = vpop.f32.mrf.mxu3 }
 0x117   : > { %658 = vst [vmem:[%s1044_s30 + $0x168] sm:$0xff] %v556_v6 }
 0x118   : > { %674 = vst [vmem:[%s1044_s30 + $0x1e8] sm:$0xff] %v604_v7 }
 0x11a   : > { %v463_v8 = vpop.f32.mrf.mxu0  ;;  %v511_v9 = vpop.f32.mrf.mxu1 }
 0x11b   : > { %627 = vst [vmem:[%s1044_s30 + $0x70] sm:$0xff] %v463_v8 }
 0x11c   : > { %643 = vst [vmem:[%s1044_s30 + $0xf0] sm:$0xff] %v511_v9 }
 0x11e   : > { %v559_v10 = vpop.f32.mrf.mxu2  ;;  %v607_v11 = vpop.f32.mrf.mxu3 }
 0x11f   : > { %659 = vst [vmem:[%s1044_s30 + $0x170] sm:$0xff] %v559_v10 }
 0x120   : > { %675 = vst [vmem:[%s1044_s30 + $0x1f0] sm:$0xff] %v607_v11 }
 0x122   : > { %v466_v12 = vpop.f32.mrf.mxu0  ;;  %v514_v13 = vpop.f32.mrf.mxu1 }
 0x123   : > { %628 = vst [vmem:[%s1044_s30 + $0x78] sm:$0xff] %v466_v12 }
 0x124   : > { %644 = vst [vmem:[%s1044_s30 + $0xf8] sm:$0xff] %v514_v13 }
 0x126   : > { %v562_v14 = vpop.f32.mrf.mxu2  ;;  %v610_v15 = vpop.f32.mrf.mxu3 }
 0x127   : > { %660 = vst [vmem:[%s1044_s30 + $0x178] sm:$0xff] %v562_v14 }
 0x128   : > { %676 = vst [vmem:[%s1044_s30 + $0x1f8] sm:$0xff] %v610_v15 }
 0x129 PF: > { %s13_s12 = sadd.s32 1, %s820_s12  }
 0x12a   : > { %p10_p4 = scmp.ge.s32.totalorder %s13_s12, 4  }
 0x12c   :  { %12 = sbr.rel (!%p10_p4) target bundleno = 1 (0x1), region = 65 }

</bundles_post_ra>
